<compile_context>
chip_gen: v7x
topology: tpu7x:2x2x1
jax: 0.10.0
libtpu: 0.0.40
codegen_flags: <defaults>
</compile_context>

<pallas_src>
import functools

import numpy as np
import jax
import jax.numpy as jnp
from jax.experimental import pallas as pl
from jax.experimental.pallas import tpu as pltpu

LANE = 128      # lane width: feature / class dims padded to multiples of this
SUB = 8         # sublane width: row tiles must be multiples of this
NEG = -1e30     # "masked" logit -> exp() == 0 exactly in f32


def _round_up(n: int, m: int) -> int:
    return ((n + m - 1) // m) * m


# --------------------------------------------------------------------------
# Fused kernel: one row tile of the full forward.
#   refs = [x,
#           (w, b) * n1,           hidden1 stack
#           wp, bp,                parent linear
#           (w, b) * n2,           hidden2 stack
#           wc, bc, onehot, onehot_t,
#           out]
# --------------------------------------------------------------------------
def _fused_hsm_kernel(*refs, n1: int, n2: int):
    it = iter(refs)
    x_ref = next(it)

    h = x_ref[...]                                            # bf16 (tm, d0p)
    for _ in range(n1):
        w_ref = next(it)
        b_ref = next(it)
        a = jnp.dot(h, w_ref[...], preferred_element_type=jnp.float32) + b_ref[...]
        h = jnp.maximum(a, 0.0).astype(jnp.bfloat16)
    # TODO(synk): nn.Dropout(p=0.1) is identity in eval mode; training-mode
    # random masking (pltpu.prng_*) is intentionally omitted (deterministic fwd).

    # Parent softmax over Gpad lanes (padded parent cols carry a -1e30 bias).
    wp_ref = next(it)
    bp_ref = next(it)
    p = jnp.dot(h, wp_ref[...], preferred_element_type=jnp.float32) + bp_ref[...]
    p = p - jnp.max(p, axis=-1, keepdims=True)
    pe = jnp.exp(p)
    parent = pe / jnp.sum(pe, axis=-1, keepdims=True)         # (tm, Gpad) f32

    h2 = h
    for _ in range(n2):
        w_ref = next(it)
        b_ref = next(it)
        a = jnp.dot(h2, w_ref[...], preferred_element_type=jnp.float32) + b_ref[...]
        h2 = jnp.maximum(a, 0.0).astype(jnp.bfloat16)

    wc_ref = next(it)
    bc_ref = next(it)
    oh_ref = next(it)      # (Lpad, Gpad): column -> its group (padded cols all-zero)
    oht_ref = next(it)     # (Gpad, Lpad): transpose, precomputed on host
    o_ref = next(it)

    # Dense packed child logits: (tm, Lpad); pad-slot mask is folded into bc.
    c = jnp.dot(h2, wc_ref[...], preferred_element_type=jnp.float32) + bc_ref[...]
    # Per-group softmax is invariant to subtracting any per-row constant, so a
    # single global row max stabilizes every group at once (pads sit at -1e30).
    c = c - jnp.max(c, axis=-1, keepdims=True)
    e = jnp.exp(c)                                            # pad columns -> exactly 0

    # Segment (per-group) denominators + broadcast-back, both as one-hot MXU
    # matmuls -> no per-group Python loop, one lane-dense store at the end.
    sums = jnp.dot(e, oh_ref[...], preferred_element_type=jnp.float32)     # (tm, Gpad)
    # Floor the denominator: avoids 0/0 for padded groups and for the
    # (pathological) case where a whole group underflows; parent is 0 there.
    scale_g = parent / jnp.maximum(sums, 1e-30)                            # (tm, Gpad)
    scale = jnp.dot(scale_g, oht_ref[...], preferred_element_type=jnp.float32)  # (tm, Lpad)

    o_ref[...] = (e * scale).astype(o_ref.dtype)


# --------------------------------------------------------------------------
# Parameter packing (host-side, done once). Weights stored as bf16, biases f32.
# Child columns are packed densely and already in restoreIndex (label-id) order.
# --------------------------------------------------------------------------
def prepare_params(raw, hierarchical_structure, lab2id):
    f32, bf16 = jnp.float32, jnp.bfloat16

    def pad_w(w, rows, cols):
        w = np.asarray(w, np.float32)
        out = np.zeros((rows, cols), np.float32)
        out[:w.shape[0], :w.shape[1]] = w
        return jnp.asarray(out, bf16)

    def pad_b(b, cols, fill=0.0):
        b = np.asarray(b, np.float32).reshape(-1)
        out = np.full((1, cols), fill, np.float32)
        out[0, :b.shape[0]] = b
        return jnp.asarray(out, f32)

    params = {}
    d0p = _round_up(raw['in_size'], LANE)
    params['d0p'] = d0p

    def pack_stack(stack, d_in_p):
        packed, d = [], d_in_p
        for (w, b) in stack:
            n_p = _round_up(w.shape[1], LANE)
            packed.append((pad_w(w, d, n_p), pad_b(b, n_p)))
            d = n_p
        return packed, d

    params['hidden1'], d1p = pack_stack(raw['hidden1'], d0p)
    params['hidden2'], d2p = pack_stack(raw['hidden2'], d1p)
    params['d1p'], params['d2p'] = d1p, d2p

    n_groups = len(hierarchical_structure)
    gpad = _round_up(n_groups, LANE)
    wp, bp = raw['parent']
    params['wp'] = pad_w(wp, d1p, gpad)
    params['bp'] = pad_b(bp, gpad, fill=NEG)       # padded parent cols -> prob 0
    params['Gpad'] = gpad
    params['n_groups'] = n_groups

    # ---- dense child packing, columns pre-ordered in restoreIndex order ----
    sizes = [len(g) for g in hierarchical_structure]
    offsets = np.concatenate([[0], np.cumsum(sizes)])
    flat_ids = np.asarray([lab2id[l] for grp in hierarchical_structure for l in grp])
    flat_grp = np.asarray([g for g, grp in enumerate(hierarchical_structure)
                           for _ in grp])
    order = np.argsort(flat_ids, kind="stable")    # == module.restoreIndex
    n_labels = int(len(flat_ids))
    lpad = _round_up(n_labels, LANE)

    wc = np.zeros((d2p, lpad), np.float32)
    bc = np.full((1, lpad), NEG, np.float32)       # pad mask folded into the bias
    onehot = np.zeros((lpad, gpad), np.float32)
    for k in range(n_labels):
        p_flat = int(order[k])
        g = int(flat_grp[p_flat])
        j = int(p_flat - offsets[g])
        w_g, b_g = raw['children'][g]
        w_g = np.asarray(w_g, np.float32)
        b_g = np.asarray(b_g, np.float32).reshape(-1)
        wc[:w_g.shape[0], k] = w_g[:, j]
        bc[0, k] = b_g[j]
        onehot[k, g] = 1.0

    params['wc'] = jnp.asarray(wc, bf16)
    params['bc'] = jnp.asarray(bc, f32)
    params['onehot'] = jnp.asarray(onehot, f32)
    params['onehot_t'] = jnp.asarray(np.ascontiguousarray(onehot.T), f32)
    params['Lpad'] = lpad
    params['n_labels'] = n_labels
    return params


# --------------------------------------------------------------------------
# Forward pass (single fused pallas_call).
# --------------------------------------------------------------------------
def hierarchical_softmax_forward(x, params):
    batch, d_in = x.shape
    d0p, d1p, d2p = params['d0p'], params['d1p'], params['d2p']
    lpad, gpad = params['Lpad'], params['Gpad']
    n1, n2 = len(params['hidden1']), len(params['hidden2'])

    # Row tiling: multiple of 8, <= 512; only pad the batch to a multiple of 8,
    # the (possibly ragged) last block is handled by Pallas.
    bpad8 = _round_up(max(batch, 1), SUB)
    tm = min(512, _round_up(max(bpad8 // 2, SUB), SUB))
    grid = (pl.cdiv(bpad8, tm),)

    xb = jnp.pad(x.astype(jnp.bfloat16), ((0, bpad8 - batch), (0, d0p - d_in)))

    def const_spec(shape):
        return pl.BlockSpec(shape, lambda i: (0, 0))   # resident weights / biases

    operands = [xb]
    in_specs = [pl.BlockSpec((tm, d0p), lambda i: (i, 0))]
    for (w, b) in params['hidden1']:
        operands += [w, b]
        in_specs += [const_spec(w.shape), const_spec(b.shape)]
    operands += [params['wp'], params['bp']]
    in_specs += [const_spec(params['wp'].shape), const_spec(params['bp'].shape)]
    for (w, b) in params['hidden2']:
        operands += [w, b]
        in_specs += [const_spec(w.shape), const_spec(b.shape)]
    operands += [params['wc'], params['bc'], params['onehot'], params['onehot_t']]
    in_specs += [const_spec(params['wc'].shape), const_spec(params['bc'].shape),
                 const_spec(params['onehot'].shape), const_spec(params['onehot_t'].shape)]

    out_specs = pl.BlockSpec((tm, lpad), lambda i: (i, 0))

    # Cost estimate (matmul flops + exp count + HBM bytes).
    mm_dims = []
    d_prev = d0p
    for (w, _) in params['hidden1']:
        mm_dims.append((d_prev, w.shape[1])); d_prev = w.shape[1]
    mm_dims.append((d1p, gpad))
    d_prev = d1p
    for (w, _) in params['hidden2']:
        mm_dims.append((d_prev, w.shape[1])); d_prev = w.shape[1]
    mm_dims += [(d2p, lpad), (lpad, gpad), (gpad, lpad)]
    flops = int(sum(2 * bpad8 * k * n for k, n in mm_dims))
    transc = int(bpad8 * (gpad + lpad))
    weight_bytes = int(sum(op.size * op.dtype.itemsize for op in operands[1:]))
    bytes_accessed = int(xb.size * xb.dtype.itemsize + weight_bytes + bpad8 * lpad * 4)

    # Explicit VMEM budget: double-buffered row tiles + resident weights + slack.
    tile_io = tm * d0p * 2 + tm * lpad * 4
    interm = 4 * tm * (d1p + d2p + 3 * lpad + 3 * gpad)
    vmem_limit = int(min(max(2 * tile_io + 2 * weight_bytes + interm + (2 << 20),
                             32 << 20), 64 << 20))

    out = pl.pallas_call(
        functools.partial(_fused_hsm_kernel, n1=n1, n2=n2),
        out_shape=jax.ShapeDtypeStruct((bpad8, lpad), jnp.float32),
        grid=grid,
        in_specs=in_specs,
        out_specs=out_specs,
        compiler_params=pltpu.CompilerParams(
            dimension_semantics=("parallel",),
            vmem_limit_bytes=vmem_limit),
        cost_estimate=pl.CostEstimate(
            flops=flops, transcendentals=transc, bytes_accessed=bytes_accessed),
    )(*operands)

    # Columns already in restoreIndex order -> static slice, no gather.
    return out[:batch, :params['n_labels']]


# --------------------------------------------------------------------------
# Pure-JAX reference (mirrors the PyTorch forward, eval-mode dropout, f32).
# --------------------------------------------------------------------------
def _reference_forward(x, raw, hierarchical_structure, lab2id):
    hi = jax.lax.Precision.HIGHEST
    h = x
    for (w, b) in raw['hidden1']:
        h = jnp.maximum(jnp.dot(h, w, precision=hi) + b, 0.0)
    wp, bp = raw['parent']
    parent = jax.nn.softmax(jnp.dot(h, wp, precision=hi) + bp, axis=1)
    h2 = h
    for (w, b) in raw['hidden2']:
        h2 = jnp.maximum(jnp.dot(h2, w, precision=hi) + b, 0.0)
    ys = []
    for g, (w, b) in enumerate(raw['children']):
        child = jax.nn.softmax(jnp.dot(h2, w, precision=hi) + b, axis=1)
        ys.append(parent[:, g:g + 1] * child)
    y = jnp.concatenate(ys, axis=1)
    flat_ids = [lab2id[l] for grp in hierarchical_structure for l in grp]
    restore = np.argsort(np.asarray(flat_ids))
    return y[:, restore]


if __name__ == "__main__":
    # Small config consistent with the module: batch=2, inSize=32,
    # hiddenList1=[32], hiddenList2=[16], 3 top-level groups over 8 labels.
    BATCH, IN_SIZE = 2, 32
    HIDDEN1, HIDDEN2 = [32], [16]
    structure = [['c', 'a'], ['d', 'b', 'f'], ['e', 'g', 'h']]   # non-trivial restoreIndex
    lab2id = {l: i for i, l in enumerate('abcdefgh')}
    n_groups = len(structure)

    key = jax.random.PRNGKey(0)
    keys = iter(jax.random.split(key, 16))

    def dense_init(k, d_in, d_out):
        kw, kb = jax.random.split(k)
        w = jax.random.normal(kw, (d_in, d_out), jnp.float32) * 0.1
        b = jax.random.normal(kb, (d_out,), jnp.float32) * 0.1
        return w, b

    raw = {'in_size': IN_SIZE, 'hidden1': [], 'hidden2': [], 'children': []}
    d = IN_SIZE
    for n in HIDDEN1:
        raw['hidden1'].append(dense_init(next(keys), d, n)); d = n
    raw['parent'] = dense_init(next(keys), d, n_groups)
    for n in HIDDEN2:
        raw['hidden2'].append(dense_init(next(keys), d, n)); d = n
    for grp in structure:
        raw['children'].append(dense_init(next(keys), d, len(grp)))

    x = jax.random.normal(next(keys), (BATCH, IN_SIZE), jnp.float32)

    params = prepare_params(raw, structure, lab2id)
    fwd = jax.jit(lambda xx: hierarchical_softmax_forward(xx, params))

    out = jax.block_until_ready(fwd(x))
    ref = _reference_forward(x, raw, structure, lab2id)

    total_labels = sum(len(g) for g in structure)
    assert out.shape == (BATCH, total_labels), out.shape
    # bf16 MXU inputs (per perf review) vs. an f32 HIGHEST-precision reference
    # -> tolerance is set to the bf16 error level.
    np.testing.assert_allclose(np.asarray(out), np.asarray(ref), rtol=5e-2, atol=5e-3)
    # hierarchical probabilities over the full label set sum to 1 per row
    np.testing.assert_allclose(np.asarray(out).sum(axis=1), np.ones(BATCH),
                               rtol=0.0, atol=1e-2)

    print("KERNEL_OK")
</pallas_src>

<mosaic_0001>
module attributes {stable_mosaic.version = 11 : i64} {
  func.func @_fused_hsm_kernel(%arg0: i32, %arg1: memref<8x128xbf16, #tpu.memory_space<vmem>>, %arg2: memref<128x128xbf16, #tpu.memory_space<vmem>>, %arg3: memref<1x128xf32, #tpu.memory_space<vmem>>, %arg4: memref<128x128xbf16, #tpu.memory_space<vmem>>, %arg5: memref<1x128xf32, #tpu.memory_space<vmem>>, %arg6: memref<128x128xbf16, #tpu.memory_space<vmem>>, %arg7: memref<1x128xf32, #tpu.memory_space<vmem>>, %arg8: memref<128x128xbf16, #tpu.memory_space<vmem>>, %arg9: memref<1x128xf32, #tpu.memory_space<vmem>>, %arg10: memref<128x128xf32, #tpu.memory_space<vmem>>, %arg11: memref<128x128xf32, #tpu.memory_space<vmem>>, %arg12: memref<8x128xf32, #tpu.memory_space<vmem>>) attributes {dimension_semantics = [#tpu.dimension_semantics<parallel>], iteration_bounds = array<i64: 1>, scalar_prefetch = 0 : i64, scratch_operands = 0 : i64, tpu.core_type = #tpu.core_type<tc>, window_params = [{transform_indices = @transform_0, window_bounds = array<i64: 8, 128>}, {pipeline_mode = #tpu.pipeline_mode<synchronous>, transform_indices = @transform_1, window_bounds = array<i64: 128, 128>}, {pipeline_mode = #tpu.pipeline_mode<synchronous>, transform_indices = @transform_2, window_bounds = array<i64: 1, 128>}, {pipeline_mode = #tpu.pipeline_mode<synchronous>, transform_indices = @transform_3, window_bounds = array<i64: 128, 128>}, {pipeline_mode = #tpu.pipeline_mode<synchronous>, transform_indices = @transform_4, window_bounds = array<i64: 1, 128>}, {pipeline_mode = #tpu.pipeline_mode<synchronous>, transform_indices = @transform_5, window_bounds = array<i64: 128, 128>}, {pipeline_mode = #tpu.pipeline_mode<synchronous>, transform_indices = @transform_6, window_bounds = array<i64: 1, 128>}, {pipeline_mode = #tpu.pipeline_mode<synchronous>, transform_indices = @transform_7, window_bounds = array<i64: 128, 128>}, {pipeline_mode = #tpu.pipeline_mode<synchronous>, transform_indices = @transform_8, window_bounds = array<i64: 1, 128>}, {pipeline_mode = #tpu.pipeline_mode<synchronous>, transform_indices = @transform_9, window_bounds = array<i64: 128, 128>}, {pipeline_mode = #tpu.pipeline_mode<synchronous>, transform_indices = @transform_10, window_bounds = array<i64: 128, 128>}, {transform_indices = @transform_11, window_bounds = array<i64: 8, 128>}]} {
    %c0 = arith.constant 0 : index
    %c0_0 = arith.constant 0 : index
    %0 = vector.load %arg1[%c0, %c0_0] : memref<8x128xbf16, #tpu.memory_space<vmem>>, vector<8x128xbf16>
    %c0_1 = arith.constant 0 : index
    %c0_2 = arith.constant 0 : index
    %1 = vector.load %arg2[%c0_1, %c0_2] : memref<128x128xbf16, #tpu.memory_space<vmem>>, vector<128x128xbf16>
    %cst = arith.constant dense<0.000000e+00> : vector<8x128xf32>
    %2 = tpu.matmul %0, %1, %cst {dimension_numbers = #tpu.dot_dimension_numbers<[1], [0], [0], [1], [0, 0, 1, 1], [], []>} : vector<8x128xbf16>, vector<128x128xbf16>, vector<8x128xf32> -> vector<8x128xf32>
    %c0_3 = arith.constant 0 : index
    %c0_4 = arith.constant 0 : index
    %3 = vector.load %arg3[%c0_3, %c0_4] : memref<1x128xf32, #tpu.memory_space<vmem>>, vector<1x128xf32>
    %4 = vector.broadcast %3 : vector<1x128xf32> to vector<8x128xf32>
    %5 = arith.addf %2, %4 : vector<8x128xf32>
    %cst_5 = arith.constant 0.000000e+00 : f32
    %6 = vector.broadcast %cst_5 : f32 to vector<8x128xf32>
    %7 = arith.maximumf %5, %6 : vector<8x128xf32>
    %8 = arith.truncf %7 : vector<8x128xf32> to vector<8x128xbf16>
    %c0_6 = arith.constant 0 : index
    %c0_7 = arith.constant 0 : index
    %9 = vector.load %arg4[%c0_6, %c0_7] : memref<128x128xbf16, #tpu.memory_space<vmem>>, vector<128x128xbf16>
    %cst_8 = arith.constant dense<0.000000e+00> : vector<8x128xf32>
    %10 = tpu.matmul %8, %9, %cst_8 {dimension_numbers = #tpu.dot_dimension_numbers<[1], [0], [0], [1], [0, 0, 1, 1], [], []>} : vector<8x128xbf16>, vector<128x128xbf16>, vector<8x128xf32> -> vector<8x128xf32>
    %c0_9 = arith.constant 0 : index
    %c0_10 = arith.constant 0 : index
    %11 = vector.load %arg5[%c0_9, %c0_10] : memref<1x128xf32, #tpu.memory_space<vmem>>, vector<1x128xf32>
    %12 = vector.broadcast %11 : vector<1x128xf32> to vector<8x128xf32>
    %13 = arith.addf %10, %12 : vector<8x128xf32>
    %cst_11 = arith.constant dense<0xFF800000> : vector<8xf32>
    %14 = vector.multi_reduction <maximumf>, %13, %cst_11 [1] : vector<8x128xf32> to vector<8xf32>
    %15 = vector.shape_cast %14 : vector<8xf32> to vector<8x1xf32>
    %16 = vector.broadcast %15 : vector<8x1xf32> to vector<8x128xf32>
    %17 = arith.subf %13, %16 : vector<8x128xf32>
    %18 = math.exp %17 : vector<8x128xf32>
    %cst_12 = arith.constant dense<0.000000e+00> : vector<8xf32>
    %19 = vector.multi_reduction <add>, %18, %cst_12 [1] : vector<8x128xf32> to vector<8xf32>
    %20 = vector.shape_cast %19 : vector<8xf32> to vector<8x1xf32>
    %21 = vector.broadcast %20 : vector<8x1xf32> to vector<8x128xf32>
    %22 = arith.divf %18, %21 : vector<8x128xf32>
    %c0_13 = arith.constant 0 : index
    %c0_14 = arith.constant 0 : index
    %23 = vector.load %arg6[%c0_13, %c0_14] : memref<128x128xbf16, #tpu.memory_space<vmem>>, vector<128x128xbf16>
    %cst_15 = arith.constant dense<0.000000e+00> : vector<8x128xf32>
    %24 = tpu.matmul %8, %23, %cst_15 {dimension_numbers = #tpu.dot_dimension_numbers<[1], [0], [0], [1], [0, 0, 1, 1], [], []>} : vector<8x128xbf16>, vector<128x128xbf16>, vector<8x128xf32> -> vector<8x128xf32>
    %c0_16 = arith.constant 0 : index
    %c0_17 = arith.constant 0 : index
    %25 = vector.load %arg7[%c0_16, %c0_17] : memref<1x128xf32, #tpu.memory_space<vmem>>, vector<1x128xf32>
    %26 = vector.broadcast %25 : vector<1x128xf32> to vector<8x128xf32>
    %27 = arith.addf %24, %26 : vector<8x128xf32>
    %cst_18 = arith.constant 0.000000e+00 : f32
    %28 = vector.broadcast %cst_18 : f32 to vector<8x128xf32>
    %29 = arith.maximumf %27, %28 : vector<8x128xf32>
    %30 = arith.truncf %29 : vector<8x128xf32> to vector<8x128xbf16>
    %c0_19 = arith.constant 0 : index
    %c0_20 = arith.constant 0 : index
    %31 = vector.load %arg8[%c0_19, %c0_20] : memref<128x128xbf16, #tpu.memory_space<vmem>>, vector<128x128xbf16>
    %cst_21 = arith.constant dense<0.000000e+00> : vector<8x128xf32>
    %32 = tpu.matmul %30, %31, %cst_21 {dimension_numbers = #tpu.dot_dimension_numbers<[1], [0], [0], [1], [0, 0, 1, 1], [], []>} : vector<8x128xbf16>, vector<128x128xbf16>, vector<8x128xf32> -> vector<8x128xf32>
    %c0_22 = arith.constant 0 : index
    %c0_23 = arith.constant 0 : index
    %33 = vector.load %arg9[%c0_22, %c0_23] : memref<1x128xf32, #tpu.memory_space<vmem>>, vector<1x128xf32>
    %34 = vector.broadcast %33 : vector<1x128xf32> to vector<8x128xf32>
    %35 = arith.addf %32, %34 : vector<8x128xf32>
    %cst_24 = arith.constant dense<0xFF800000> : vector<8xf32>
    %36 = vector.multi_reduction <maximumf>, %35, %cst_24 [1] : vector<8x128xf32> to vector<8xf32>
    %37 = vector.shape_cast %36 : vector<8xf32> to vector<8x1xf32>
    %38 = vector.broadcast %37 : vector<8x1xf32> to vector<8x128xf32>
    %39 = arith.subf %35, %38 : vector<8x128xf32>
    %40 = math.exp %39 : vector<8x128xf32>
    %c0_25 = arith.constant 0 : index
    %c0_26 = arith.constant 0 : index
    %41 = vector.load %arg10[%c0_25, %c0_26] : memref<128x128xf32, #tpu.memory_space<vmem>>, vector<128x128xf32>
    %cst_27 = arith.constant dense<0.000000e+00> : vector<8x128xf32>
    %42 = tpu.matmul %40, %41, %cst_27 {dimension_numbers = #tpu.dot_dimension_numbers<[1], [0], [0], [1], [0, 0, 1, 1], [], []>} : vector<8x128xf32>, vector<128x128xf32>, vector<8x128xf32> -> vector<8x128xf32>
    %cst_28 = arith.constant 1.000000e-30 : f32
    %43 = vector.broadcast %cst_28 : f32 to vector<8x128xf32>
    %44 = arith.maximumf %42, %43 : vector<8x128xf32>
    %45 = arith.divf %22, %44 : vector<8x128xf32>
    %c0_29 = arith.constant 0 : index
    %c0_30 = arith.constant 0 : index
    %46 = vector.load %arg11[%c0_29, %c0_30] : memref<128x128xf32, #tpu.memory_space<vmem>>, vector<128x128xf32>
    %cst_31 = arith.constant dense<0.000000e+00> : vector<8x128xf32>
    %47 = tpu.matmul %45, %46, %cst_31 {dimension_numbers = #tpu.dot_dimension_numbers<[1], [0], [0], [1], [0, 0, 1, 1], [], []>} : vector<8x128xf32>, vector<128x128xf32>, vector<8x128xf32> -> vector<8x128xf32>
    %48 = arith.mulf %40, %47 : vector<8x128xf32>
    %c0_32 = arith.constant 0 : index
    %c0_33 = arith.constant 0 : index
    %49 = vector.load %arg12[%c0_32, %c0_33] : memref<8x128xf32, #tpu.memory_space<vmem>>, vector<8x128xf32>
    tpu.vector_store %arg12[%c0_32, %c0_33], %48 {strides = array<i32>} : memref<8x128xf32, #tpu.memory_space<vmem>>, vector<8x128xf32>,
    return
  }
  func.func @transform_0(%arg0: i32) -> (i32, i32) {
    %c0_i32 = arith.constant 0 : i32
    %c0_i32_0 = arith.constant 0 : i32
    return %arg0, %c0_i32 : i32, i32
  }
  func.func @transform_1(%arg0: i32) -> (i32, i32) {
    %c0_i32 = arith.constant 0 : i32
    %c0_i32_0 = arith.constant 0 : i32
    %c0_i32_1 = arith.constant 0 : i32
    return %c0_i32, %c0_i32_0 : i32, i32
  }
  func.func @transform_2(%arg0: i32) -> (i32, i32) {
    %c0_i32 = arith.constant 0 : i32
    %c0_i32_0 = arith.constant 0 : i32
    %c0_i32_1 = arith.constant 0 : i32
    return %c0_i32, %c0_i32_0 : i32, i32
  }
  func.func @transform_3(%arg0: i32) -> (i32, i32) {
    %c0_i32 = arith.constant 0 : i32
    %c0_i32_0 = arith.constant 0 : i32
    %c0_i32_1 = arith.constant 0 : i32
    return %c0_i32, %c0_i32_0 : i32, i32
  }
  func.func @transform_4(%arg0: i32) -> (i32, i32) {
    %c0_i32 = arith.constant 0 : i32
    %c0_i32_0 = arith.constant 0 : i32
    %c0_i32_1 = arith.constant 0 : i32
    return %c0_i32, %c0_i32_0 : i32, i32
  }
  func.func @transform_5(%arg0: i32) -> (i32, i32) {
    %c0_i32 = arith.constant 0 : i32
    %c0_i32_0 = arith.constant 0 : i32
    %c0_i32_1 = arith.constant 0 : i32
    return %c0_i32, %c0_i32_0 : i32, i32
  }
  func.func @transform_6(%arg0: i32) -> (i32, i32) {
    %c0_i32 = arith.constant 0 : i32
    %c0_i32_0 = arith.constant 0 : i32
    %c0_i32_1 = arith.constant 0 : i32
    return %c0_i32, %c0_i32_0 : i32, i32
  }
  func.func @transform_7(%arg0: i32) -> (i32, i32) {
    %c0_i32 = arith.constant 0 : i32
    %c0_i32_0 = arith.constant 0 : i32
    %c0_i32_1 = arith.constant 0 : i32
    return %c0_i32, %c0_i32_0 : i32, i32
  }
  func.func @transform_8(%arg0: i32) -> (i32, i32) {
    %c0_i32 = arith.constant 0 : i32
    %c0_i32_0 = arith.constant 0 : i32
    %c0_i32_1 = arith.constant 0 : i32
    return %c0_i32, %c0_i32_0 : i32, i32
  }
  func.func @transform_9(%arg0: i32) -> (i32, i32) {
    %c0_i32 = arith.constant 0 : i32
    %c0_i32_0 = arith.constant 0 : i32
    %c0_i32_1 = arith.constant 0 : i32
    return %c0_i32, %c0_i32_0 : i32, i32
  }
  func.func @transform_10(%arg0: i32) -> (i32, i32) {
    %c0_i32 = arith.constant 0 : i32
    %c0_i32_0 = arith.constant 0 : i32
    %c0_i32_1 = arith.constant 0 : i32
    return %c0_i32, %c0_i32_0 : i32, i32
  }
  func.func @transform_11(%arg0: i32) -> (i32, i32) {
    %c0_i32 = arith.constant 0 : i32
    %c0_i32_0 = arith.constant 0 : i32
    return %arg0, %c0_i32 : i32, i32
  }
}

</mosaic_0001>

<bundles_post_ra>
// kernel: _lambda_.1
= control target key start
LH: loop header
LB: loop body
LE: loop exit
PB: predicated region body
PF: predicated region fallthrough
CT: control target
= control target key end

     0   :  { %16 = vsyncpa [#allocation3], 0  ;;  %s1574_s0 = inlined_call_operand.vmem [shape: bf16[8,128], index: 0, kind: input, shape index: {}]   ;;  %s1575_s1 = inlined_call_operand.hbm [shape: bf16[128,128], index: 1, kind: input, shape index: {}]   ;;  %s1576_s2 = inlined_call_operand.hbm [shape: f32[1,128], index: 2, kind: input, shape index: {}]   ;;  %s1577_s3 = inlined_call_operand.hbm [shape: bf16[128,128], index: 3, kind: input, shape index: {}]   ;;  %s1578_s4 = inlined_call_operand.hbm [shape: f32[1,128], index: 4, kind: input, shape index: {}]   ;;  %s1579_s5 = inlined_call_operand.hbm [shape: bf16[128,128], index: 5, kind: input, shape index: {}]   ;;  %s1580_s6 = inlined_call_operand.vmem [shape: f32[1,128], index: 6, kind: input, shape index: {}]   ;;  %s1581_s7 = inlined_call_operand.vmem [shape: bf16[128,128], index: 7, kind: input, shape index: {}]   ;;  %s1582_s8 = inlined_call_operand.vmem [shape: f32[1,128], index: 8, kind: input, shape index: {}]   ;;  %s1583_s9 = inlined_call_operand.hbm [shape: f32[128,128], index: 9, kind: input, shape index: {}]   ;;  %s1584_s10 = inlined_call_operand.hbm [shape: f32[128,128], index: 10, kind: input, shape index: {}]   ;;  %s1585_s11 = inlined_call_operand.vmem [shape: f32[8,128], index: 11, kind: output, shape index: {}]  }
   0x1   :  { %17 = vsyncpa [#allocation5], 0 }
   0x2   :  { %18 = vsyncpa [#allocation8], 0 }
   0x3   :  { %19 = vsyncpa [#allocation11], 0  ;;  %s1298_s17 = smov [#allocation4]   ;;  %s1299_s19 = smov [#allocation7]  }
   0x4   :  { %s40_s18 = sshll.u32 %s1298_s17, 4  ;;  %s62_s20 = sshll.u32 %s1299_s19, 4  ;;  %s41_s18 = int_to_ptr.vmem [resolvable:$true] %s40_s18  ;;  %s63_s20 = int_to_ptr.vmem [resolvable:$true] %s62_s20 }
   0x5   :  { %s1136_s23 = scalar_lea.hbm %s1576_s2, 16 }
   0x6   :  { %p1137_p0 = scmp.ne.s32.totalorder %s1576_s2, %s1136_s23  ;;  %p1140_p1 = scmp.lt.u32.totalorder %s1136_s23, %s1576_s2 }
   0x8   :  { %p1142_p2 = pnand %p1140_p1, %p1137_p0 }
   0xa   :  { %1145 = shalt.err (!%p1142_p2)
}
   0xb   :  { %s1146_s28 = scalar_lea.vmem %s41_s18, 16  ;;  %s1150_s29 = scalar_lea.vmem %s41_s18, 32 }
   0xc   :  { %p1147_p3 = scmp.ne.s32.totalorder %s41_s18, %s1146_s28  ;;  %p1151_p4 = scmp.lt.s32.totalorder %s41_s18, %s41_s18 }
   0xd   :  { %p1152_p5 = scmp.lt.s32.totalorder %s1150_s29, %s1146_s28 }
   0xf   :  { %p1153_p6 = por %p1152_p5, %p1151_p4 }
  0x11   :  { %p1154_p7 = pnand %p1153_p6, %p1147_p3 }
  0x13   :  { %1157 = shalt.err (!%p1154_p7)
}
  0x14   :  { %43 = dma.hbm_to_vmem [thread:$0]  %s1576_s2, 16, %s41_s18, [#allocation5]  }
  0x15   :  { %s1158_s15 = scalar_lea.hbm %s1578_s4, 16 }
  0x16   :  { %p1159_p8 = scmp.ne.s32.totalorder %s1578_s4, %s1158_s15  ;;  %p1162_p9 = scmp.lt.u32.totalorder %s1158_s15, %s1578_s4 }
  0x18   :  { %p1164_p10 = pnand %p1162_p9, %p1159_p8 }
  0x1a   :  { %1167 = shalt.err (!%p1164_p10)
}
  0x1b   :  { %s1168_s22 = scalar_lea.vmem %s63_s20, 16  ;;  %s1172_s23 = scalar_lea.vmem %s63_s20, 32 }
  0x1c   :  { %p1169_p11 = scmp.ne.s32.totalorder %s63_s20, %s1168_s22  ;;  %p1173_p12 = scmp.lt.s32.totalorder %s63_s20, %s63_s20 }
  0x1d   :  { %p1174_p13 = scmp.lt.s32.totalorder %s1172_s23, %s1168_s22 }
  0x1f   :  { %p1175_p0 = por %p1174_p13, %p1173_p12 }
  0x21   :  { %p1176_p1 = pnand %p1175_p0, %p1169_p11 }
  0x23   :  { %1179 = shalt.err (!%p1176_p1)
}
  0x24   :  { %65 = dma.hbm_to_vmem [thread:$0]  %s1578_s4, 16, %s63_s20, [#allocation8]  }
  0x25   :  { %s1300_s24 = smov [#allocation10]   ;;  %s1180_s28 = scalar_lea.hbm %s1583_s9, 2048 }
  0x26   :  { %s89_s25 = sshll.u32 %s1300_s24, 4  ;;  %p1181_p2 = scmp.ne.s32.totalorder %s1583_s9, %s1180_s28  ;;  %s90_s25 = int_to_ptr.vmem [resolvable:$true] %s89_s25 }
  0x27   :  { %p1184_p3 = scmp.lt.u32.totalorder %s1180_s28, %s1583_s9 }
  0x29   :  { %p1186_p4 = pnand %p1184_p3, %p1181_p2 }
  0x2b   :  { %1189 = shalt.err (!%p1186_p4)
}
  0x2c   :  { %s1190_s14 = scalar_lea.vmem %s90_s25, 2048  ;;  %p1195_p6 = scmp.lt.s32.totalorder %s90_s25, %s90_s25 }
  0x2d   :  { %p1191_p5 = scmp.ne.s32.totalorder %s90_s25, %s1190_s14  ;;  %p1196_p7 = scmp.lt.s32.totalorder %s1190_s14, %s1190_s14 }
  0x2f   :  { %p1197_p8 = por %p1196_p7, %p1195_p6 }
  0x31   :  { %p1198_p9 = pnand %p1197_p8, %p1191_p5 }
  0x33   :  { %1201 = shalt.err (!%p1198_p9)
}
  0x34   :  { %s1301_s4 = smov 128   ;;  %s1302_s20 = smov 8  }
  0x35   :  { %95 = dma.hbm_to_vmem [thread:$0]  %s1583_s9, 2048, %s90_s25, [#allocation11], %s1301_s4, %s1301_s4, %s1302_s20  }
  0x36   :  { %s1303_s17 = smov [#allocation2]   ;;  %s1202_s23 = scalar_lea.hbm %s1575_s1, 1024 }
  0x37   :  { %s27_s19 = sshll.u32 %s1303_s17, 4  ;;  %p1203_p10 = scmp.ne.s32.totalorder %s1575_s1, %s1202_s23  ;;  %s28_s19 = int_to_ptr.vmem [resolvable:$true] %s27_s19 }
  0x38   :  { %p1206_p11 = scmp.lt.u32.totalorder %s1202_s23, %s1575_s1 }
  0x3a   :  { %p1208_p12 = pnand %p1206_p11, %p1203_p10 }
  0x3c   :  { %1211 = shalt.err (!%p1208_p12)
}
  0x3d   :  { %s1212_s27 = scalar_lea.vmem %s28_s19, 1024  ;;  %p1217_p0 = scmp.lt.s32.totalorder %s28_s19, %s28_s19 }
  0x3e   :  { %p1213_p13 = scmp.ne.s32.totalorder %s28_s19, %s1212_s27  ;;  %p1218_p1 = scmp.lt.s32.totalorder %s1212_s27, %s1212_s27 }
  0x40   :  { %p1219_p2 = por %p1218_p1, %p1217_p0 }
  0x42   :  { %p1220_p3 = pnand %p1219_p2, %p1213_p13 }
  0x44   :  { %1223 = shalt.err (!%p1220_p3)
}
  0x45   :  { %s1304_s9 = smov 64   ;;  %s1305_s25 = smov 4  }
  0x46   :  { %33 = dma.hbm_to_vmem [thread:$0]  %s1575_s1, 1024, %s28_s19, [#allocation3], %s1304_s9, %s1304_s9, %s1305_s25  }
  0x47   :  { %s1306_s30 = smov [#allocation6]   ;;  %s1307_s13 = smov [#allocation9]  }
  0x48   :  { %s49_s12 = sshll.u32 %s1306_s30, 4  ;;  %s71_s14 = sshll.u32 %s1307_s13, 4  ;;  %s50_s12 = int_to_ptr.vmem [resolvable:$true] %s49_s12  ;;  %s1426_s14 = int_to_ptr.vmem [resolvable:$true] %s71_s14 }
  0x49   :  { %s1224_s17 = scalar_lea.hbm %s1577_s3, 1024 }
  0x4a   :  { %p1225_p4 = scmp.ne.s32.totalorder %s1577_s3, %s1224_s17  ;;  %p1228_p5 = scmp.lt.u32.totalorder %s1224_s17, %s1577_s3 }
  0x4c   :  { %p1230_p6 = pnand %p1228_p5, %p1225_p4 }
  0x4e   :  { %1233 = shalt.err (!%p1230_p6)
}
  0x4f   :  { %s1234_s1 = scalar_lea.vmem %s50_s12, 1024  ;;  %p1239_p8 = scmp.lt.s32.totalorder %s50_s12, %s50_s12 }
  0x50   :  { %p1235_p7 = scmp.ne.s32.totalorder %s50_s12, %s1234_s1  ;;  %p1240_p9 = scmp.lt.s32.totalorder %s1234_s1, %s1234_s1 }
  0x52   :  { %p1241_p10 = por %p1240_p9, %p1239_p8 }
  0x54   :  { %p1242_p11 = pnand %p1241_p10, %p1235_p7 }
  0x56   :  { %1245 = shalt.err (!%p1242_p11)
}
  0x57   :  { %55 = dma.hbm_to_vmem [thread:$0]  %s1577_s3, 1024, %s50_s12, [#allocation5], %s1304_s9, %s1304_s9, %s1305_s25  }
  0x58   :  { %s1246_s27 = scalar_lea.hbm %s1579_s5, 1024 }
  0x59   :  { %p1247_p12 = scmp.ne.s32.totalorder %s1579_s5, %s1246_s27  ;;  %p1250_p13 = scmp.lt.u32.totalorder %s1246_s27, %s1579_s5 }
  0x5b   :  { %p1252_p0 = pnand %p1250_p13, %p1247_p12 }
  0x5d   :  { %1255 = shalt.err (!%p1252_p0)
}
  0x5e   :  { %s1256_s15 = scalar_lea.vmem %s1426_s14, 1024  ;;  %p1261_p2 = scmp.lt.s32.totalorder %s1426_s14, %s1426_s14 }
  0x5f   :  { %p1257_p1 = scmp.ne.s32.totalorder %s1426_s14, %s1256_s15  ;;  %p1262_p3 = scmp.lt.s32.totalorder %s1256_s15, %s1256_s15 }
  0x61   :  { %p1263_p4 = por %p1262_p3, %p1261_p2 }
  0x63   :  { %p1264_p5 = pnand %p1263_p4, %p1257_p1 }
  0x65   :  { %1267 = shalt.err (!%p1264_p5)
}
  0x66   :  { %77 = dma.hbm_to_vmem [thread:$0]  %s1579_s5, 1024, %s1426_s14, [#allocation8], %s1304_s9, %s1304_s9, %s1305_s25  }
  0x67   :  { %s1308_s16 = smov [#allocation12]   ;;  %s1268_s23 = scalar_lea.hbm %s1584_s10, 2048 }
  0x68   :  { %s101_s17 = sshll.u32 %s1308_s16, 4  ;;  %p1269_p6 = scmp.ne.s32.totalorder %s1584_s10, %s1268_s23  ;;  %s102_s17 = int_to_ptr.vmem [resolvable:$true] %s101_s17 }
  0x69   :  { %p1272_p7 = scmp.lt.u32.totalorder %s1268_s23, %s1584_s10 }
  0x6b   :  { %p1274_p8 = pnand %p1272_p7, %p1269_p6 }
  0x6d   :  { %1277 = shalt.err (!%p1274_p8)
}
  0x6e   :  { %s1278_s24 = scalar_lea.vmem %s102_s17, 2048  ;;  %p1283_p10 = scmp.lt.s32.totalorder %s102_s17, %s102_s17 }
  0x6f   :  { %p1279_p9 = scmp.ne.s32.totalorder %s102_s17, %s1278_s24  ;;  %p1284_p11 = scmp.lt.s32.totalorder %s1278_s24, %s1278_s24 }
  0x71   :  { %p1285_p12 = por %p1284_p11, %p1283_p10 }
  0x73   :  { %p1286_p13 = pnand %p1285_p12, %p1279_p9 }
  0x75   :  { %1289 = shalt.err (!%p1286_p13)
}
  0x76   :  { %107 = dma.hbm_to_vmem [thread:$0]  %s1584_s10, 2048, %s102_s17, [#allocation11], %s1301_s4, %s1301_s4, %s1302_s20  }
  0x77   :  { %1290 = dma.done.wait [#allocation3], 1024  }
  0x78   :  { %1291 = vsyncadd [#allocation3], 4294966272 }
  0x79   :  { %1292 = dma.done.wait [#allocation5], 1040  }
  0x7a   :  { %1293 = vsyncadd [#allocation5], 4294966256 }
  0x7b   :  { %1294 = dma.done.wait [#allocation8], 1040  }
  0x7c   :  { %1295 = vsyncadd [#allocation8], 4294966256 }
  0x7d   :  { %1296 = dma.done.wait [#allocation11], 4096  }
  0x7e   :  { %1297 = vsyncadd [#allocation11], 4294963200  ;;  %v1309_v0 = vmov 0.0   ;;  %vm1310_vm0 = vmmov 0   ;;  %v1096_v1 = vld [vmem:[#allocation2] sm:$0xff]   ;;  %v1097_v2 = vld [vmem:[#allocation2 + $0x8] sm:$0xff]  }
  0x7f   :  { %884 = vmatprep.subr.bf16.mxu0 %v1309_v0  ;;  %900 = vmatprep.mubr.msk.bf16.mxu0 %vm1310_vm0, %v1309_v0  ;;  %v1098_v3 = vld [vmem:[#allocation2 + $0x10] sm:$0xff]   ;;  %v1104_v4 = vld [vmem:[#allocation6] sm:$0xff]   ;;  %v1099_v5 = vld [vmem:[#allocation2 + $0x18] sm:$0xff]   ;;  %v1311_v57 = vmov 0.0|0.0  }
  0x80   :  { %904 = vmatprep.subr.bf16.mxu1 %v1309_v0  ;;  %920 = vmatprep.mubr.msk.bf16.mxu1 %vm1310_vm0, %v1309_v0  ;;  %v1106_v6 = vld [vmem:[#allocation6 + $0x8] sm:$0xff]   ;;  %v1100_v7 = vld [vmem:[#allocation2 + $0x20] sm:$0xff]   ;;  %v1108_v8 = vld [vmem:[#allocation6 + $0x10] sm:$0xff]  }
  0x81   :  { %885 = vmatpush3.bf16.msra.mxu0 %v1096_v1  ;;  %905 = vmatpush3.bf16.msra.mxu1 %v1104_v4  ;;  %v1101_v9 = vld [vmem:[#allocation2 + $0x28] sm:$0xff]   ;;  %v1110_v10 = vld [vmem:[#allocation6 + $0x18] sm:$0xff]   ;;  %v1102_v11 = vld [vmem:[#allocation2 + $0x30] sm:$0xff]  }
  0x82   :  { %886 = vmatprep.subr.bf16.mxu0 %v1309_v0  ;;  %906 = vmatprep.subr.bf16.mxu1 %v1309_v0  ;;  %v1112_v12 = vld [vmem:[#allocation6 + $0x20] sm:$0xff]   ;;  %v1103_v13 = vld [vmem:[#allocation2 + $0x38] sm:$0xff]   ;;  %v1114_v14 = vld [vmem:[#allocation6 + $0x28] sm:$0xff]  }
  0x83   :  { %v130_v15 = vld [vmem:[%s1574_s0] sm:$0xf]  ;;  %v1105_v16 = vld [vmem:[#allocation9] sm:$0xff]   ;;  %v1107_v17 = vld [vmem:[#allocation9 + $0x8] sm:$0xff]  }
  0x84   :  { %v1109_v18 = vld [vmem:[#allocation9 + $0x10] sm:$0xff]   ;;  %v1111_v19 = vld [vmem:[#allocation9 + $0x18] sm:$0xff]   ;;  %v1113_v20 = vld [vmem:[#allocation9 + $0x20] sm:$0xff]  }
  0x85   :  { %887 = vmatpush3.bf16.msra.mxu0 %v1097_v2  ;;  %907 = vmatpush3.bf16.msra.mxu1 %v1106_v6  ;;  %v1115_v21 = vld [vmem:[#allocation9 + $0x28] sm:$0xff]   ;;  %v1117_v23 = vld [vmem:[#allocation9 + $0x30] sm:$0xff]   ;;  %v1119_v25 = vld [vmem:[#allocation9 + $0x38] sm:$0xff]  }
  0x86   :  { %888 = vmatprep.subr.bf16.mxu0 %v1309_v0  ;;  %908 = vmatprep.subr.bf16.mxu1 %v1309_v0  ;;  %v1116_v22 = vld [vmem:[#allocation6 + $0x30] sm:$0xff]   ;;  %v1118_v24 = vld [vmem:[#allocation6 + $0x38] sm:$0xff]   ;;  %v1121_v35 = vld [vmem:[%s1581_s7 + $0x8] sm:$0xff]  }
  0x87   :  { %v778_v26 = vld [vmem:[#allocation4] ss:$0 sm:$0xff]  ;;  %v1122_v36 = vld [vmem:[%s1581_s7 + $0x10] sm:$0xff]   ;;  %v1123_v37 = vld [vmem:[%s1581_s7 + $0x18] sm:$0xff]  }
  0x88   :  { %v1120_v33 = vld [vmem:[%s1581_s7] sm:$0xff]   ;;  %v1125_v39 = vld [vmem:[%s1581_s7 + $0x28] sm:$0xff]   ;;  %v1126_v40 = vld [vmem:[%s1581_s7 + $0x30] sm:$0xff]  }
  0x89   :  { %889 = vmatpush3.bf16.msra.mxu0 %v1098_v3  ;;  %909 = vmatpush3.bf16.msra.mxu1 %v1108_v8  ;;  %v1124_v38 = vld [vmem:[%s1581_s7 + $0x20] sm:$0xff]   ;;  %v1127_v41 = vld [vmem:[%s1581_s7 + $0x38] sm:$0xff]   ;;  %v594_v55 = vld [vmem:[#allocation10 + $0x8] sm:$0xff] }
  0x8a   :  { %890 = vmatprep.subr.bf16.mxu0 %v1309_v0  ;;  %910 = vmatprep.subr.bf16.mxu1 %v1309_v0  ;;  %v796_v42 = vld [vmem:[%s1580_s6] ss:$0 sm:$0xff]  ;;  %v593_v54 = vld [vmem:[#allocation10] sm:$0xff]  ;;  %v595_v56 = vld [vmem:[#allocation10 + $0x10] sm:$0xff] }
  0x8b   :  { %v1035_v58 = vpack.c.bf16 %v594_v55, %v593_v54  ;;  %v596_v59 = vld [vmem:[#allocation10 + $0x18] sm:$0xff]  ;;  %v597_v61 = vld [vmem:[#allocation10 + $0x20] sm:$0xff]  ;;  %v598_v62 = vld [vmem:[#allocation10 + $0x28] sm:$0xff] }
  0x8c   :  { %v1038_v60 = vpack.c.bf16 %v596_v59, %v595_v56  ;;  %v1041_v63 = vpack.c.bf16 %v598_v62, %v597_v61  ;;  %v600_v1 = vld [vmem:[#allocation10 + $0x38] sm:$0xff] }
  0x8d   :  { %891 = vmatpush3.bf16.msra.mxu0 %v1099_v5  ;;  %911 = vmatpush3.bf16.msra.mxu1 %v1110_v10  ;;  %v805_v3 = vld [vmem:[%s1582_s8] ss:$0 sm:$0xff] }
  0x8e   :  { %892 = vmatprep.subr.bf16.mxu0 %v1309_v0  ;;  %912 = vmatprep.subr.bf16.mxu1 %v1309_v0 }
  0x91   :  { %893 = vmatpush3.bf16.msra.mxu0 %v1100_v7  ;;  %913 = vmatpush3.bf16.msra.mxu1 %v1112_v12  ;;  %v787_v7 = vld [vmem:[#allocation7] ss:$0 sm:$0xff]  ;;  %v602_v12 = vld [vmem:[#allocation10 + $0x48] sm:$0xff] }
  0x92   :  { %894 = vmatprep.subr.bf16.mxu0 %v1309_v0  ;;  %914 = vmatprep.subr.bf16.mxu1 %v1309_v0 }
  0x95   :  { %895 = vmatpush3.bf16.msra.mxu0 %v1101_v9  ;;  %915 = vmatpush3.bf16.msra.mxu1 %v1114_v14  ;;  %v603_v14 = vld [vmem:[#allocation10 + $0x50] sm:$0xff] }
  0x96   :  { %896 = vmatprep.subr.bf16.mxu0 %v1309_v0  ;;  %916 = vmatprep.subr.bf16.mxu1 %v1309_v0 }
  0x99   :  { %897 = vmatpush3.bf16.msra.mxu0 %v1102_v11  ;;  %917 = vmatpush3.bf16.msra.mxu1 %v1116_v22  ;;  %v601_v11 = vld [vmem:[#allocation10 + $0x40] sm:$0xff] }
  0x9a   :  { %898 = vmatprep.subr.bf16.mxu0 %v1309_v0  ;;  %918 = vmatprep.subr.bf16.mxu1 %v1309_v0 }
  0x9d   :  { %899 = vmatpush3.bf16.msra.mxu0 %v1103_v13  ;;  %919 = vmatpush3.bf16.msra.mxu1 %v1118_v24  ;;  %v1047_v13 = vpack.c.bf16 %v602_v12, %v601_v11 }
  0x9e   :  { %924 = vmatprep.subr.bf16.mxu0 %v1309_v0  ;;  %944 = vmatprep.subr.bf16.mxu1 %v1309_v0 }
  0xa0   :  { %901 = vmatmul.mubr.bf16.vlgmr.msra.gmra.mrb[0].mxu0 %v130_v15  ;;  %v604_v15 = vld [vmem:[#allocation10 + $0x58] sm:$0xff] }
  0xa1   :  { %925 = vmatpush3.bf16.msra.mxu0 %v1105_v16  ;;  %940 = vmatprep.mubr.msk.bf16.mxu0 %vm1310_vm0, %v1309_v0  ;;  %v1050_v16 = vpack.c.bf16 %v604_v15, %v603_v14 }
  0xa2   :  { %926 = vmatprep.subr.bf16.mxu0 %v1309_v0 }
  0xa5   :  { %927 = vmatpush3.bf16.msra.mxu0 %v1107_v17  ;;  %v605_v17 = vld [vmem:[#allocation10 + $0x60] sm:$0xff] }
  0xa6   :  { %928 = vmatprep.subr.bf16.mxu0 %v1309_v0 }
  0xa9   :  { %929 = vmatpush3.bf16.msra.mxu0 %v1109_v18  ;;  %v606_v18 = vld [vmem:[#allocation10 + $0x68] sm:$0xff] }
  0xaa   :  { %930 = vmatprep.subr.bf16.mxu0 %v1309_v0 }
  0xad   :  { %931 = vmatpush3.bf16.msra.mxu0 %v1111_v19  ;;  %v1053_v19 = vpack.c.bf16 %v606_v18, %v605_v17 }
  0xae   :  { %932 = vmatprep.subr.bf16.mxu0 %v1309_v0 }
  0xb1   :  { %933 = vmatpush3.bf16.msra.mxu0 %v1113_v20  ;;  %v607_v20 = vld [vmem:[#allocation10 + $0x70] sm:$0xff] }
  0xb2   :  { %934 = vmatprep.subr.bf16.mxu0 %v1309_v0 }
  0xb5   :  { %935 = vmatpush3.bf16.msra.mxu0 %v1115_v21  ;;  %v608_v21 = vld [vmem:[#allocation10 + $0x78] sm:$0xff] }
  0xb6   :  { %936 = vmatprep.subr.bf16.mxu0 %v1309_v0  ;;  %v1056_v22 = vpack.c.bf16 %v608_v21, %v607_v20 }
  0xb9   :  { %937 = vmatpush3.bf16.msra.mxu0 %v1117_v23 }
  0xba   :  { %938 = vmatprep.subr.bf16.mxu0 %v1309_v0 }
  0xbd   :  { %939 = vmatpush3.bf16.msra.mxu0 %v1119_v25 }
  0xbe   :  { %1034 = vmatprep.subr.bf16.mxu0 %v1311_v57 }
 0x173   :  { %v236_v27 = vpop.f32.mrb[0].mxu0 }
 0x174   :  { %v237_v28 = vadd.f32 %v778_v26, %v236_v27  ;;  %v902_v29 = vpop.f32.mrb[1].mxu0 }
 0x175   :  { %v239_v30 = vpop.f32.mrb[2].mxu0 }
 0x176   :  { %v242_v31 = vmax.f32 %v237_v28, 0.0  ;;  %v903_v32 = vpop.f32.mrb[3].mxu0 }
 0x177   :  { %v683_v32 = vld [vmem:[#allocation12 + $0x8] sm:$0xff] }
 0x178   :  { %v243_v34 = vpack.c.bf16 %v242_v31, %v242_v31  ;;  %v682_v31 = vld [vmem:[#allocation12] sm:$0xff] }
 0x17a   :  { %921 = vmatmul.mubr.bf16.vlgmr.msra.gmra.mrb[0].mxu1 %v243_v34  ;;  %941 = vmatmul.mubr.bf16.vlgmr.msra.gmra.mrb[4].mxu0 %v243_v34  ;;  %v1059_v34 = vpack.c.bf16 %v683_v32, %v682_v31 }
 0x17b   :  { %945 = vmatpush3.bf16.msra.mxu1 %v1120_v33  ;;  %960 = vmatprep.mubr.msk.bf16.mxu1 %vm1310_vm0, %v1309_v0  ;;  %v684_v33 = vld [vmem:[#allocation12 + $0x10] sm:$0xff] }
 0x17c   :  { %946 = vmatprep.subr.bf16.mxu1 %v1309_v0  ;;  %996 = vmatprep.mubr.msk.f32.mxu0 %vm1310_vm0, %v1309_v0 }
 0x17d   :  { %1036 = vmatpush3.bf16.msra.mxu0 %v1035_v58 }
 0x17e   :  { %1037 = vmatprep.subr.bf16.mxu0 %v1311_v57 }
 0x17f   :  { %947 = vmatpush3.bf16.msra.mxu1 %v1121_v35  ;;  %v685_v35 = vld [vmem:[#allocation12 + $0x18] sm:$0xff] }
 0x180   :  { %948 = vmatprep.subr.bf16.mxu1 %v1309_v0 }
 0x181   :  { %1039 = vmatpush3.bf16.msra.mxu0 %v1038_v60 }
 0x182   :  { %1040 = vmatprep.subr.bf16.mxu0 %v1311_v57 }
 0x183   :  { %949 = vmatpush3.bf16.msra.mxu1 %v1122_v36  ;;  %v1062_v36 = vpack.c.bf16 %v685_v35, %v684_v33 }
 0x184   :  { %950 = vmatprep.subr.bf16.mxu1 %v1309_v0 }
 0x185   :  { %1042 = vmatpush3.bf16.msra.mxu0 %v1041_v63 }
 0x186   :  { %1043 = vmatprep.subr.bf16.mxu0 %v1311_v57 }
 0x187   :  { %951 = vmatpush3.bf16.msra.mxu1 %v1123_v37  ;;  %v686_v37 = vld [vmem:[#allocation12 + $0x20] sm:$0xff] }
 0x188   :  { %952 = vmatprep.subr.bf16.mxu1 %v1309_v0 }
 0x18b   :  { %953 = vmatpush3.bf16.msra.mxu1 %v1124_v38  ;;  %v687_v38 = vld [vmem:[#allocation12 + $0x28] sm:$0xff] }
 0x18c   :  { %954 = vmatprep.subr.bf16.mxu1 %v1309_v0 }
 0x18f   :  { %955 = vmatpush3.bf16.msra.mxu1 %v1125_v39  ;;  %v1065_v39 = vpack.c.bf16 %v687_v38, %v686_v37 }
 0x190   :  { %956 = vmatprep.subr.bf16.mxu1 %v1309_v0 }
 0x193   :  { %957 = vmatpush3.bf16.msra.mxu1 %v1126_v40  ;;  %v688_v40 = vld [vmem:[#allocation12 + $0x30] sm:$0xff] }
 0x194   :  { %958 = vmatprep.subr.bf16.mxu1 %v1309_v0 }
 0x197   :  { %959 = vmatpush3.bf16.msra.mxu1 %v1127_v41  ;;  %v689_v41 = vld [vmem:[#allocation12 + $0x38] sm:$0xff] }
 0x198   :  { %1058 = vmatprep.subr.bf16.mxu1 %v1311_v57 }
 0x24d   :  { %v349_v43 = vpop.f32.mrb[0].mxu1  ;;  %v469_v44 = vpop.f32.mrb[4].mxu0 }
 0x24e   :  { %v470_v45 = vadd.f32 %v796_v42, %v469_v44  ;;  %v922_v46 = vpop.f32.mrb[1].mxu1  ;;  %v942_v47 = vpop.f32.mrb[5].mxu0  ;;  %v350_v10 = vadd.f32 %v787_v7, %v349_v43  ;;  %v1068_v42 = vpack.c.bf16 %v689_v41, %v688_v40  ;;  %v690_v43 = vld [vmem:[#allocation12 + $0x40] sm:$0xff]  ;;  %v691_v44 = vld [vmem:[#allocation12 + $0x48] sm:$0xff] }
 0x24f   :  { %v352_v48 = vpop.f32.mrb[2].mxu1  ;;  %v472_v49 = vpop.f32.mrb[6].mxu0  ;;  %v692_v46 = vld [vmem:[#allocation12 + $0x50] sm:$0xff]  ;;  %v693_v47 = vld [vmem:[#allocation12 + $0x58] sm:$0xff] }
 0x250   :  { %v475_v50 = vmax.f32 %v470_v45, 0.0  ;;  %v923_v51 = vpop.f32.mrb[3].mxu1  ;;  %v943_v52 = vpop.f32.mrb[7].mxu0  ;;  %v1071_v45 = vpack.c.bf16 %v691_v44, %v690_v43  ;;  %v1074_v48 = vpack.c.bf16 %v693_v47, %v692_v46  ;;  %v694_v49 = vld [vmem:[#allocation12 + $0x60] sm:$0xff] }
 0x251   :  { %v696_v52 = vld [vmem:[#allocation12 + $0x70] sm:$0xff] }
 0x252   :  { %v476_v53 = vpack.c.bf16 %v475_v50, %v475_v50  ;;  %v695_v50 = vld [vmem:[#allocation12 + $0x68] sm:$0xff] }
 0x253   :  { %v1077_v51 = vpack.c.bf16 %v695_v50, %v694_v49 }
 0x254   :  { %961 = vmatmul.mubr.bf16.vlgmr.msra.gmra.mrb[4].mxu1 %v476_v53  ;;  %v697_v53 = vld [vmem:[#allocation12 + $0x78] sm:$0xff] }
 0x255   :  { %1031 = vmatprep.mubr.msk.f32.mxu1 %vm1310_vm0, %v1309_v0  ;;  %v599_v0 = vld [vmem:[#allocation10 + $0x30] sm:$0xff]  ;;  %1060 = vmatpush3.bf16.msra.mxu1 %v1059_v34  ;;  %v1080_v54 = vpack.c.bf16 %v697_v53, %v696_v52 }
 0x256   :  { %v1044_v2 = vpack.c.bf16 %v600_v1, %v599_v0  ;;  %1061 = vmatprep.subr.bf16.mxu1 %v1311_v57 }
 0x258   :  { %1045 = vmatpush3.bf16.msra.mxu0 %v1044_v2 }
 0x259   :  { %1046 = vmatprep.subr.bf16.mxu0 %v1311_v57  ;;  %1063 = vmatpush3.bf16.msra.mxu1 %v1062_v36 }
 0x25a   :  { %1064 = vmatprep.subr.bf16.mxu1 %v1311_v57 }
 0x25c   :  { %1048 = vmatpush3.bf16.msra.mxu0 %v1047_v13 }
 0x25d   :  { %1049 = vmatprep.subr.bf16.mxu0 %v1311_v57  ;;  %1066 = vmatpush3.bf16.msra.mxu1 %v1065_v39 }
 0x25e   :  { %1067 = vmatprep.subr.bf16.mxu1 %v1311_v57 }
 0x260   :  { %1051 = vmatpush3.bf16.msra.mxu0 %v1050_v16 }
 0x261   :  { %1052 = vmatprep.subr.bf16.mxu0 %v1311_v57  ;;  %1069 = vmatpush3.bf16.msra.mxu1 %v1068_v42 }
 0x262   :  { %1070 = vmatprep.subr.bf16.mxu1 %v1311_v57 }
 0x264   :  { %1054 = vmatpush3.bf16.msra.mxu0 %v1053_v19 }
 0x265   :  { %1055 = vmatprep.subr.bf16.mxu0 %v1311_v57  ;;  %1072 = vmatpush3.bf16.msra.mxu1 %v1071_v45 }
 0x266   :  { %1073 = vmatprep.subr.bf16.mxu1 %v1311_v57 }
 0x268   :  { %1057 = vmatpush3.bf16.msra.mxu0 %v1056_v22 }
 0x269   :  { %1075 = vmatpush3.bf16.msra.mxu1 %v1074_v48 }
 0x26a   :  { %1076 = vmatprep.subr.bf16.mxu1 %v1311_v57 }
 0x26d   :  { %1078 = vmatpush3.bf16.msra.mxu1 %v1077_v51 }
 0x26e   :  { %1079 = vmatprep.subr.bf16.mxu1 %v1311_v57 }
 0x271   :  { %1081 = vmatpush3.bf16.msra.mxu1 %v1080_v54 }
 0x327   :  { %v582_v4 = vpop.f32.mrb[4].mxu1 }
 0x328   :  { %v583_v5 = vadd.f32 %v805_v3, %v582_v4  ;;  %v962_v6 = vpop.f32.mrb[5].mxu1 }
 0x329   :  { %v585_v8 = vpop.f32.mrb[6].mxu1 }
 0x32a   :  { %588 = vmax.xlane.f32.xlu0 %v583_v5  ;;  %v963_v9 = vpop.f32.mrb[7].mxu1 }
 0x32e   :  { %355 = vmax.xlane.f32.xlu0 %v350_v10 }
 0x3b7   :  { %v589_v23 = vpop.xlane.xlu0 %588 }
 0x3b8   :  { %v590_v24 = vsub.f32 %v583_v5, %v589_v23 }
 0x3ba   :  { %v591_v25 = vmul.f32 1.442695, %v590_v24 }
 0x3bb   :  { %v356_v26 = vpop.xlane.xlu0 %355 }
 0x3bc   :  { %1128 = vpow2.f32 %v591_v25  ;;  %v357_v27 = vsub.f32 %v350_v10, %v356_v26 }
 0x3be   :  { %v358_v28 = vmul.f32 1.442695, %v357_v27 }
 0x3c0   :  { %1130 = vpow2.f32 %v358_v28 }
 0x3c6   :  { %v1129_v29 = vpop.eup %1128 }
 0x3c7   :  { %997 = vmatmul.mubr.f32.vlgmr.msra.gmra.mrb[8].mxu0 %v1129_v29 }
 0x3ca   :  { %v1131_v30 = vpop.eup %1130 }
 0x3cb   :  { %360 = vadd.xlane.f32.xlu1 %v1131_v30 }
 0x458   :  { %v361_v55 = vpop.xlane.xlu1 %360 }
 0x459   :  { %1132 = vrcp.f32 %v361_v55 }
 0x463   :  { %v1133_v60 = vpop.eup %1132 }
 0x464   :  { %v363_v61 = vmul.f32 %v1133_v60, %v1131_v30 }
 0x49a   :  { %v675_v56 = vpop.f32.mrb[8].mxu0 }
 0x49b   :  { %v679_v58 = vmax.f32 %v675_v56, 1e-30  ;;  %v998_v59 = vpop.f32.mrb[9].mxu0 }
 0x49d   :  { %1134 = vrcp.f32 %v679_v58 }
 0x4a7   :  { %v1135_v62 = vpop.eup %1134 }
 0x4a8   :  { %v681_v63 = vmul.f32 %v1135_v62, %v363_v61 }
 0x4aa   :  { %1032 = vmatmul.mubr.f32.vlgmr.msra.gmra.mrb[8].mxu1 %v681_v63 }
 0x57d   :  { %v764_v0 = vpop.f32.mrb[8].mxu1 }
 0x57e   :  { %v768_v1 = vmul.f32 %v1129_v29, %v764_v0  ;;  %v1033_v2 = vpop.f32.mrb[9].mxu1 }
 0x580   :  { %769 = vst [vmem:[%s1585_s11] sm:$0xff] %v768_v1 }
 0x581   :  { %774 = vsyncpa [#allocation3], 1 }
 0x582   :  { %775 = vsyncpa [#allocation5], 1 }
 0x583   :  { %776 = vsyncpa [#allocation8], 1 }
 0x584   :  { %777 = vsyncpa [#allocation11], 1 }

</bundles_post_ra>
